<compile_context>
chip_gen: v7x
topology: tpu7x:2x2x1
jax: 0.10.0
libtpu: 0.0.40
codegen_flags: <defaults>
</compile_context>

<pallas_src>
import functools

import jax
import jax.numpy as jnp
from jax.experimental import pallas as pl
from jax.experimental.pallas import tpu as pltpu


def _round_up(v, m):
    return (v + m - 1) // m * m


def coaching_kernel(x_ref, w_ref, b_ref, costs_ref, mask_ref,
                    scores_ref, packed_ref, *, policy_coeff):
    # predict_costs(state): scores = x @ W + b.
    # bf16 operands (cast once in the wrapper, streamed half-width), f32 MXU
    # accumulation; no per-grid-step casts of the resident W.
    scores = jnp.dot(x_ref[...], w_ref[...],
                     preferred_element_type=jnp.float32)        # [tb, A_pad] f32
    scores = scores + b_ref[...].astype(jnp.float32)
    scores_ref[...] = scores                                    # lane-dense f32

    mask = mask_ref[...] > 0.5                    # allowed actions (pads False)
    costs = costs_ref[...].astype(jnp.float32)    # reference min-costs-to-go
    big = jnp.float32(1e30)
    tb, a_pad = scores.shape
    a_iota = jax.lax.broadcasted_iota(jnp.int32, scores.shape, 1)

    # pol = policy(state): first-occurrence argmin of predicted costs over the
    # allowed actions.  Rows with no allowed action deterministically give 0.
    sc_masked = jnp.where(mask, scores, big)
    sc_min = jnp.min(sc_masked, axis=-1, keepdims=True)
    pol = jnp.min(jnp.where(sc_masked == sc_min, a_iota, a_pad),
                  axis=-1, keepdims=True)                       # [tb, 1] i32

    # ref = argmin(ref_costs + policy_coeff * pred_costs, allowed actions).
    coached = costs + jnp.float32(policy_coeff) * scores
    co_masked = jnp.where(mask, coached, big)
    co_min = jnp.min(co_masked, axis=-1, keepdims=True)
    ref = jnp.min(jnp.where(co_masked == co_min, a_iota, a_pad),
                  axis=-1, keepdims=True)                       # [tb, 1] i32

    # objective += policy.update(pred_costs, ref, actions): squared loss of the
    # predicted costs against the {0,1} cost vector implied by ref, restricted
    # to allowed actions.  Reduced per row; the wrapper sums the column.
    target = jnp.where(a_iota == ref, jnp.float32(0.0), jnp.float32(1.0))
    diff = jnp.where(mask, scores - target, jnp.float32(0.0))
    row_obj = jnp.sum(diff * diff, axis=-1, keepdims=True)      # [tb, 1] f32

    # Lane-dense packed output: lane 0 = ref action, lane 1 = pol action,
    # lane 2 = per-row objective, remaining lanes explicitly zero.  Action
    # indices are tiny integers, exactly representable in f32.
    lane = jax.lax.broadcasted_iota(jnp.int32, (tb, 128), 1)
    packed_ref[...] = jnp.where(
        lane == 0, ref.astype(jnp.float32),
        jnp.where(lane == 1, pol.astype(jnp.float32),
                  jnp.where(lane == 2, row_obj, jnp.float32(0.0))))


def coaching_forward(x, w, b, ref_costs, action_mask,
                     policy_coeff=0.0, p_rollin_ref=0.0, block_b=512):
    """Batched Coaching forward pass.

    Returns (chosen_action [B,1] i32, ref_action [B,1] i32, pol_action [B,1] i32,
             scores [B,A] f32, objective [1,1] f32).
    """
    B, D = x.shape
    A = w.shape[1]
    A_pad = _round_up(A, 128)                       # lane-dense action axis
    # tb multiple of 16 (bf16 sublane packing); block_b default 512 keeps the
    # mem-bound pipeline near the HBM roofline while staying well under VMEM.
    tb = min(_round_up(block_b, 16), _round_up(B, 16))
    B_pad = _round_up(B, tb)
    nb = B_pad // tb

    def pad_cast(a, r, c, dt):
        a = jnp.asarray(a, jnp.float32)
        return jnp.pad(a, ((0, r - a.shape[0]), (0, c - a.shape[1]))).astype(dt)

    bf16 = jnp.bfloat16
    x_p = pad_cast(x, B_pad, D, bf16)                 # streamed half-width
    w_p = pad_cast(w, D, A_pad, bf16)                 # resident, half footprint
    b_p = pad_cast(b, 1, A_pad, bf16)                 # resident
    costs_p = pad_cast(ref_costs, B_pad, A_pad, bf16)
    mask_p = pad_cast(action_mask, B_pad, A_pad, bf16)  # 0/1 exact in bf16

    kernel = functools.partial(coaching_kernel, policy_coeff=float(policy_coeff))

    scores_p, packed_p = pl.pallas_call(
        kernel,
        out_shape=(
            jax.ShapeDtypeStruct((B_pad, A_pad), jnp.float32),
            jax.ShapeDtypeStruct((B_pad, 128), jnp.float32),
        ),
        grid=(nb,),
        in_specs=[
            pl.BlockSpec((tb, D), lambda i: (i, 0)),        # x tile (bf16)
            pl.BlockSpec((D, A_pad), lambda i: (0, 0)),     # W resident (bf16)
            pl.BlockSpec((1, A_pad), lambda i: (0, 0)),     # b resident (bf16)
            pl.BlockSpec((tb, A_pad), lambda i: (i, 0)),    # ref costs tile
            pl.BlockSpec((tb, A_pad), lambda i: (i, 0)),    # action mask tile
        ],
        out_specs=(
            pl.BlockSpec((tb, A_pad), lambda i: (i, 0)),    # scores (lane-dense)
            pl.BlockSpec((tb, 128), lambda i: (i, 0)),      # ref/pol/obj packed
        ),
        compiler_params=pltpu.CompilerParams(
            dimension_semantics=("parallel",),              # megacore on v7x
            vmem_limit_bytes=48 * 1024 * 1024,              # headroom on v7x 64 MiB
        ),
    )(x_p, w_p, b_p, costs_p, mask_p)

    scores = scores_p[:B, :A]
    ref_act = packed_p[:B, 0:1].astype(jnp.int32)
    pol_act = packed_p[:B, 1:2].astype(jnp.int32)
    # Padded rows wrote 0 to lane 2, so summing the whole column is exact.
    obj = jnp.sum(packed_p[:, 2]).reshape(1, 1)

    # return ref if self.rollin_ref() else pol.
    # TODO(synk): stochastic(NoAnnealing(p)) is a per-call coin flip; with
    # p_rollin_ref = 0 it is (a.s.) always False, modeled here as p > 0.
    rollin = jnp.asarray(p_rollin_ref, jnp.float32) > 0.0
    chosen = jnp.where(rollin, ref_act, pol_act)
    return chosen, ref_act, pol_act, scores, obj


if __name__ == "__main__":
    key = jax.random.PRNGKey(0)
    k_x, k_w, k_b, k_c = jax.random.split(key, 4)

    B, D, A = 8, 32, 16          # batch of states, feature dim, n_actions
    policy_coeff = 0.5

    x = jax.random.normal(k_x, (B, D), dtype=jnp.float32)
    # Deterministic synthetic linear-policy parameters (not a checkpoint).
    w = jax.random.normal(k_w, (D, A), dtype=jnp.float32) * 0.1
    b = jax.random.normal(k_b, (1, A), dtype=jnp.float32) * 0.01
    # Reference min-costs-to-go (non-negative) and allowed-action mask.
    ref_costs = jax.random.uniform(k_c, (B, A), dtype=jnp.float32)
    action_mask = jnp.ones((B, A), dtype=jnp.float32)   # all actions allowed

    chosen, ref_act, pol_act, scores, obj = coaching_forward(
        x, w, b, ref_costs, action_mask,
        policy_coeff=policy_coeff, p_rollin_ref=0.0)
    jax.block_until_ready((chosen, ref_act, pol_act, scores, obj))

    # Pure-JAX reference of the same (bf16-operand, f32-accumulate) math.
    bf16 = jnp.bfloat16
    scores_ref = (jnp.dot(x.astype(bf16), w.astype(bf16),
                          preferred_element_type=jnp.float32)
                  + b.astype(bf16).astype(jnp.float32))
    costs_bf = ref_costs.astype(bf16).astype(jnp.float32)
    big = jnp.float32(1e30)
    mask_bool = action_mask > 0.5
    pol_exp = jnp.argmin(jnp.where(mask_bool, scores_ref, big), axis=-1)
    coached = costs_bf + policy_coeff * scores_ref
    ref_exp = jnp.argmin(jnp.where(mask_bool, coached, big), axis=-1)
    target = 1.0 - jax.nn.one_hot(ref_exp, A, dtype=jnp.float32)
    obj_exp = jnp.sum(jnp.where(mask_bool, scores_ref - target, 0.0) ** 2)

    assert jnp.allclose(scores, scores_ref, rtol=1e-4, atol=1e-4)
    assert jnp.array_equal(pol_act[:, 0], pol_exp)
    assert jnp.array_equal(ref_act[:, 0], ref_exp)
    assert jnp.array_equal(chosen, pol_act)   # p_rollin_ref = 0 -> return pol
    assert jnp.allclose(obj[0, 0], obj_exp, rtol=1e-4, atol=1e-4)

    print("KERNEL_OK")
</pallas_src>

<mosaic_0001>
module attributes {stable_mosaic.version = 11 : i64} {
  func.func @coaching_kernel(%arg0: i32, %arg1: memref<16x32xbf16, #tpu.memory_space<vmem>>, %arg2: memref<32x128xbf16, #tpu.memory_space<vmem>>, %arg3: memref<1x128xbf16, #tpu.memory_space<vmem>>, %arg4: memref<16x128xbf16, #tpu.memory_space<vmem>>, %arg5: memref<16x128xbf16, #tpu.memory_space<vmem>>, %arg6: memref<16x128xf32, #tpu.memory_space<vmem>>, %arg7: memref<16x128xf32, #tpu.memory_space<vmem>>) attributes {dimension_semantics = [#tpu.dimension_semantics<parallel>], iteration_bounds = array<i64: 1>, scalar_prefetch = 0 : i64, scratch_operands = 0 : i64, tpu.core_type = #tpu.core_type<tc>, window_params = [{transform_indices = @transform_0, window_bounds = array<i64: 16, 32>}, {pipeline_mode = #tpu.pipeline_mode<synchronous>, transform_indices = @transform_1, window_bounds = array<i64: 32, 128>}, {pipeline_mode = #tpu.pipeline_mode<synchronous>, transform_indices = @transform_2, window_bounds = array<i64: 1, 128>}, {transform_indices = @transform_3, window_bounds = array<i64: 16, 128>}, {transform_indices = @transform_4, window_bounds = array<i64: 16, 128>}, {transform_indices = @transform_5, window_bounds = array<i64: 16, 128>}, {transform_indices = @transform_6, window_bounds = array<i64: 16, 128>}]} {
    %c0 = arith.constant 0 : index
    %c0_0 = arith.constant 0 : index
    %0 = vector.load %arg1[%c0, %c0_0] : memref<16x32xbf16, #tpu.memory_space<vmem>>, vector<16x32xbf16>
    %c0_1 = arith.constant 0 : index
    %c0_2 = arith.constant 0 : index
    %1 = vector.load %arg2[%c0_1, %c0_2] : memref<32x128xbf16, #tpu.memory_space<vmem>>, vector<32x128xbf16>
    %cst = arith.constant dense<0.000000e+00> : vector<16x128xf32>
    %2 = tpu.matmul %0, %1, %cst {dimension_numbers = #tpu.dot_dimension_numbers<[1], [0], [0], [1], [0, 0, 1, 1], [], []>} : vector<16x32xbf16>, vector<32x128xbf16>, vector<16x128xf32> -> vector<16x128xf32>
    %c0_3 = arith.constant 0 : index
    %c0_4 = arith.constant 0 : index
    %3 = vector.load %arg3[%c0_3, %c0_4] : memref<1x128xbf16, #tpu.memory_space<vmem>>, vector<1x128xbf16>
    %4 = arith.extf %3 : vector<1x128xbf16> to vector<1x128xf32>
    %5 = vector.broadcast %4 : vector<1x128xf32> to vector<16x128xf32>
    %6 = arith.addf %2, %5 : vector<16x128xf32>
    %c0_5 = arith.constant 0 : index
    %c0_6 = arith.constant 0 : index
    %7 = vector.load %arg6[%c0_5, %c0_6] : memref<16x128xf32, #tpu.memory_space<vmem>>, vector<16x128xf32>
    tpu.vector_store %arg6[%c0_5, %c0_6], %6 {strides = array<i32>} : memref<16x128xf32, #tpu.memory_space<vmem>>, vector<16x128xf32>,
    %c0_7 = arith.constant 0 : index
    %c0_8 = arith.constant 0 : index
    %8 = vector.load %arg5[%c0_7, %c0_8] : memref<16x128xbf16, #tpu.memory_space<vmem>>, vector<16x128xbf16>
    %cst_9 = arith.constant 5.000000e-01 : bf16
    %9 = vector.broadcast %cst_9 : bf16 to vector<16x128xbf16>
    %10 = arith.cmpf ogt, %8, %9 : vector<16x128xbf16>
    %c0_10 = arith.constant 0 : index
    %c0_11 = arith.constant 0 : index
    %11 = vector.load %arg4[%c0_10, %c0_11] : memref<16x128xbf16, #tpu.memory_space<vmem>>, vector<16x128xbf16>
    %12 = arith.extf %11 : vector<16x128xbf16> to vector<16x128xf32>
    %13 = tpu.iota {dimensions = array<i32: 1>} : vector<16x128xi32>
    %cst_12 = arith.constant 1.000000e+30 : f32
    %14 = vector.broadcast %cst_12 : f32 to vector<16x128xf32>
    %15 = arith.select %10, %6, %14 : vector<16x128xi1>, vector<16x128xf32>
    %cst_13 = arith.constant dense<0x7F800000> : vector<16xf32>
    %16 = vector.multi_reduction <minimumf>, %15, %cst_13 [1] : vector<16x128xf32> to vector<16xf32>
    %17 = vector.shape_cast %16 : vector<16xf32> to vector<16x1xf32>
    %18 = vector.broadcast %17 : vector<16x1xf32> to vector<16x128xf32>
    %19 = arith.cmpf oeq, %15, %18 : vector<16x128xf32>
    %c128_i32 = arith.constant 128 : i32
    %20 = vector.broadcast %c128_i32 : i32 to vector<16x128xi32>
    %21 = arith.select %19, %13, %20 : vector<16x128xi1>, vector<16x128xi32>
    %cst_14 = arith.constant dense<2147483647> : vector<16xi32>
    %22 = vector.multi_reduction <minsi>, %21, %cst_14 [1] : vector<16x128xi32> to vector<16xi32>
    %23 = vector.shape_cast %22 : vector<16xi32> to vector<16x1xi32>
    %cst_15 = arith.constant 5.000000e-01 : f32
    %24 = vector.broadcast %cst_15 : f32 to vector<16x128xf32>
    %25 = arith.mulf %24, %6 : vector<16x128xf32>
    %26 = arith.addf %12, %25 : vector<16x128xf32>
    %cst_16 = arith.constant 1.000000e+30 : f32
    %27 = vector.broadcast %cst_16 : f32 to vector<16x128xf32>
    %28 = arith.select %10, %26, %27 : vector<16x128xi1>, vector<16x128xf32>
    %cst_17 = arith.constant dense<0x7F800000> : vector<16xf32>
    %29 = vector.multi_reduction <minimumf>, %28, %cst_17 [1] : vector<16x128xf32> to vector<16xf32>
    %30 = vector.shape_cast %29 : vector<16xf32> to vector<16x1xf32>
    %31 = vector.broadcast %30 : vector<16x1xf32> to vector<16x128xf32>
    %32 = arith.cmpf oeq, %28, %31 : vector<16x128xf32>
    %c128_i32_18 = arith.constant 128 : i32
    %33 = vector.broadcast %c128_i32_18 : i32 to vector<16x128xi32>
    %34 = arith.select %32, %13, %33 : vector<16x128xi1>, vector<16x128xi32>
    %cst_19 = arith.constant dense<2147483647> : vector<16xi32>
    %35 = vector.multi_reduction <minsi>, %34, %cst_19 [1] : vector<16x128xi32> to vector<16xi32>
    %36 = vector.shape_cast %35 : vector<16xi32> to vector<16x1xi32>
    %37 = vector.broadcast %36 : vector<16x1xi32> to vector<16x128xi32>
    %38 = arith.cmpi eq, %13, %37 : vector<16x128xi32>
    %cst_20 = arith.constant 0.000000e+00 : f32
    %cst_21 = arith.constant 1.000000e+00 : f32
    %39 = vector.broadcast %cst_20 : f32 to vector<16x128xf32>
    %40 = vector.broadcast %cst_21 : f32 to vector<16x128xf32>
    %41 = arith.select %38, %39, %40 : vector<16x128xi1>, vector<16x128xf32>
    %42 = arith.subf %6, %41 : vector<16x128xf32>
    %cst_22 = arith.constant 0.000000e+00 : f32
    %43 = vector.broadcast %cst_22 : f32 to vector<16x128xf32>
    %44 = arith.select %10, %42, %43 : vector<16x128xi1>, vector<16x128xf32>
    %45 = arith.mulf %44, %44 : vector<16x128xf32>
    %cst_23 = arith.constant dense<0.000000e+00> : vector<16xf32>
    %46 = vector.multi_reduction <add>, %45, %cst_23 [1] : vector<16x128xf32> to vector<16xf32>
    %47 = vector.shape_cast %46 : vector<16xf32> to vector<16x1xf32>
    %48 = tpu.iota {dimensions = array<i32: 1>} : vector<16x128xi32>
    %c0_i32 = arith.constant 0 : i32
    %49 = vector.broadcast %c0_i32 : i32 to vector<16x128xi32>
    %50 = arith.cmpi eq, %48, %49 : vector<16x128xi32>
    %51 = arith.sitofp %36 : vector<16x1xi32> to vector<16x1xf32>
    %c1_i32 = arith.constant 1 : i32
    %52 = vector.broadcast %c1_i32 : i32 to vector<16x128xi32>
    %53 = arith.cmpi eq, %48, %52 : vector<16x128xi32>
    %54 = arith.sitofp %23 : vector<16x1xi32> to vector<16x1xf32>
    %c2_i32 = arith.constant 2 : i32
    %55 = vector.broadcast %c2_i32 : i32 to vector<16x128xi32>
    %56 = arith.cmpi eq, %48, %55 : vector<16x128xi32>
    %cst_24 = arith.constant 0.000000e+00 : f32
    %57 = vector.shape_cast %47 : vector<16x1xf32> to vector<16x1xf32>
    %58 = vector.broadcast %57 : vector<16x1xf32> to vector<16x128xf32>
    %59 = vector.broadcast %cst_24 : f32 to vector<16x128xf32>
    %60 = arith.select %56, %58, %59 : vector<16x128xi1>, vector<16x128xf32>
    %61 = vector.shape_cast %54 : vector<16x1xf32> to vector<16x1xf32>
    %62 = vector.broadcast %61 : vector<16x1xf32> to vector<16x128xf32>
    %63 = arith.select %53, %62, %60 : vector<16x128xi1>, vector<16x128xf32>
    %64 = vector.shape_cast %51 : vector<16x1xf32> to vector<16x1xf32>
    %65 = vector.broadcast %64 : vector<16x1xf32> to vector<16x128xf32>
    %66 = arith.select %50, %65, %63 : vector<16x128xi1>, vector<16x128xf32>
    %c0_25 = arith.constant 0 : index
    %c0_26 = arith.constant 0 : index
    %67 = vector.load %arg7[%c0_25, %c0_26] : memref<16x128xf32, #tpu.memory_space<vmem>>, vector<16x128xf32>
    tpu.vector_store %arg7[%c0_25, %c0_26], %66 {strides = array<i32>} : memref<16x128xf32, #tpu.memory_space<vmem>>, vector<16x128xf32>,
    return
  }
  func.func @transform_0(%arg0: i32) -> (i32, i32) {
    %c0_i32 = arith.constant 0 : i32
    %c0_i32_0 = arith.constant 0 : i32
    return %arg0, %c0_i32 : i32, i32
  }
  func.func @transform_1(%arg0: i32) -> (i32, i32) {
    %c0_i32 = arith.constant 0 : i32
    %c0_i32_0 = arith.constant 0 : i32
    %c0_i32_1 = arith.constant 0 : i32
    return %c0_i32, %c0_i32_0 : i32, i32
  }
  func.func @transform_2(%arg0: i32) -> (i32, i32) {
    %c0_i32 = arith.constant 0 : i32
    %c0_i32_0 = arith.constant 0 : i32
    %c0_i32_1 = arith.constant 0 : i32
    return %c0_i32, %c0_i32_0 : i32, i32
  }
  func.func @transform_3(%arg0: i32) -> (i32, i32) {
    %c0_i32 = arith.constant 0 : i32
    %c0_i32_0 = arith.constant 0 : i32
    return %arg0, %c0_i32 : i32, i32
  }
  func.func @transform_4(%arg0: i32) -> (i32, i32) {
    %c0_i32 = arith.constant 0 : i32
    %c0_i32_0 = arith.constant 0 : i32
    return %arg0, %c0_i32 : i32, i32
  }
  func.func @transform_5(%arg0: i32) -> (i32, i32) {
    %c0_i32 = arith.constant 0 : i32
    %c0_i32_0 = arith.constant 0 : i32
    return %arg0, %c0_i32 : i32, i32
  }
  func.func @transform_6(%arg0: i32) -> (i32, i32) {
    %c0_i32 = arith.constant 0 : i32
    %c0_i32_0 = arith.constant 0 : i32
    return %arg0, %c0_i32 : i32, i32
  }
}

</mosaic_0001>

<bundles_post_ra>
// kernel: tpu_custom_call.1
= control target key start
LH: loop header
LB: loop body
LE: loop exit
PB: predicated region body
PF: predicated region fallthrough
CT: control target
= control target key end

     0   :  { %12 = vsyncpa [#allocation3], 0  ;;  %s656_s0 = inlined_call_operand.hbm [shape: bf16[16,32], index: 0, kind: input, shape index: {}]   ;;  %s657_s1 = inlined_call_operand.hbm [shape: bf16[32,128], index: 1, kind: input, shape index: {}]   ;;  %s658_s2 = inlined_call_operand.vmem [shape: bf16[1,128], index: 2, kind: input, shape index: {}]   ;;  %s659_s3 = inlined_call_operand.vmem [shape: bf16[16,128], index: 3, kind: input, shape index: {}]   ;;  %s660_s4 = inlined_call_operand.hbm [shape: bf16[16,128], index: 4, kind: input, shape index: {}]   ;;  %s661_s5 = inlined_call_operand.hbm [shape: f32[16,128], index: 5, kind: output, shape index: {0}]   ;;  %s662_s6 = inlined_call_operand.hbm [shape: f32[16,128], index: 6, kind: output, shape index: {1}]  }
   0x1   :  { %13 = vsyncpa [#allocation6], 0 }
   0x2   :  { %14 = vsyncpa [#allocation4], 0 }
   0x3   :  { %15 = vsyncpa [#allocation10], 0  ;;  %s457_s21 = smov [#allocation5]   ;;  %s458_s23 = smov [#allocation2]  }
   0x4   :  { %s33_s22 = sshll.u32 %s457_s21, 4  ;;  %s21_s24 = sshll.u32 %s458_s23, 4  ;;  %s34_s22 = int_to_ptr.vmem [resolvable:$true] %s33_s22  ;;  %s505_s24 = int_to_ptr.vmem [resolvable:$true] %s21_s24 }
   0x5   :  { %s339_s27 = scalar_lea.hbm %s657_s1, 256 }
   0x6   :  { %p340_p0 = scmp.ne.s32.totalorder %s657_s1, %s339_s27  ;;  %p343_p1 = scmp.lt.u32.totalorder %s339_s27, %s657_s1 }
   0x8   :  { %p345_p2 = pnand %p343_p1, %p340_p0 }
   0xa   :  { %348 = shalt.err (!%p345_p2)
}
   0xb   :  { %s349_s8 = scalar_lea.vmem %s34_s22, 256  ;;  %p354_p4 = scmp.lt.s32.totalorder %s34_s22, %s34_s22 }
   0xc   :  { %p350_p3 = scmp.ne.s32.totalorder %s34_s22, %s349_s8  ;;  %p355_p5 = scmp.lt.s32.totalorder %s349_s8, %s349_s8 }
   0xe   :  { %p356_p6 = por %p355_p5, %p354_p4 }
  0x10   :  { %p357_p7 = pnand %p356_p6, %p350_p3 }
  0x12   :  { %360 = shalt.err (!%p357_p7)
}
  0x13   :  { %s459_s9 = smov 64   ;;  %s460_s10 = smov 4  }
  0x14   :  { %39 = dma.hbm_to_vmem [thread:$0]  %s657_s1, 256, %s34_s22, [#allocation6], %s459_s9, %s459_s9, %s460_s10  }
  0x15   :  { %s361_s15 = scalar_lea.hbm %s656_s0, 128 }
  0x16   :  { %p362_p8 = scmp.ne.s32.totalorder %s656_s0, %s361_s15  ;;  %p365_p9 = scmp.lt.u32.totalorder %s361_s15, %s656_s0 }
  0x18   :  { %p367_p10 = pnand %p365_p9, %p362_p8 }
  0x1a   :  { %370 = shalt.err (!%p367_p10)
}
  0x1b   :  { %s371_s20 = scalar_lea.vmem %s505_s24, 128  ;;  %p376_p12 = scmp.lt.s32.totalorder %s505_s24, %s505_s24 }
  0x1c   :  { %p372_p11 = scmp.ne.s32.totalorder %s505_s24, %s371_s20  ;;  %p377_p13 = scmp.lt.s32.totalorder %s371_s20, %s371_s20 }
  0x1e   :  { %p378_p0 = por %p377_p13, %p376_p12 }
  0x20   :  { %p379_p1 = pnand %p378_p0, %p372_p11 }
  0x22   :  { %382 = shalt.err (!%p379_p1)
}
  0x23   :  { %27 = dma.hbm_to_vmem [thread:$0]  %s656_s0, 128, %s505_s24, [#allocation3], %s459_s9, %s459_s9, %s460_s10  }
  0x24   :  { %s461_s22 = smov [#allocation7]   ;;  %s383_s27 = scalar_lea.hbm %s660_s4, 128 }
  0x25   :  { %s49_s23 = sshll.u32 %s461_s22, 4  ;;  %p384_p2 = scmp.ne.s32.totalorder %s660_s4, %s383_s27  ;;  %s50_s23 = int_to_ptr.vmem [resolvable:$true] %s49_s23 }
  0x26   :  { %p387_p3 = scmp.lt.u32.totalorder %s383_s27, %s660_s4 }
  0x28   :  { %p389_p4 = pnand %p387_p3, %p384_p2 }
  0x2a   :  { %392 = shalt.err (!%p389_p4)
}
  0x2b   :  { %s393_s8 = scalar_lea.vmem %s50_s23, 128  ;;  %p398_p6 = scmp.lt.s32.totalorder %s50_s23, %s50_s23 }
  0x2c   :  { %p394_p5 = scmp.ne.s32.totalorder %s50_s23, %s393_s8  ;;  %p399_p7 = scmp.lt.s32.totalorder %s393_s8, %s393_s8 }
  0x2e   :  { %p400_p8 = por %p399_p7, %p398_p6 }
  0x30   :  { %p401_p9 = pnand %p400_p8, %p394_p5 }
  0x32   :  { %404 = shalt.err (!%p401_p9)
}
  0x33   :  { %55 = dma.hbm_to_vmem [thread:$0]  %s660_s4, 128, %s50_s23, [#allocation6], %s459_s9, %s459_s9, %s460_s10  }
  0x34   :  { %449 = dma.done.wait [#allocation3], 128  }
  0x35   :  { %450 = vsyncadd [#allocation3], 4294967168 }
  0x36   :  { %451 = dma.done.wait [#allocation6], 384  }
  0x37   :  { %452 = vsyncadd [#allocation6], 4294966912  ;;  %v462_v0 = vmov 0.0   ;;  %vm463_vm0 = vmmov 0   ;;  %v336_v1 = vld [vmem:[#allocation5] sm:$0xff]   ;;  %v337_v2 = vld [vmem:[#allocation5 + $0x8] sm:$0xff]   ;;  %v77_v4 = vlaneseq }
  0x38   :  { %315 = vmatprep.subr.bf16.mxu0 %v462_v0  ;;  %319 = vmatprep.mubr.msk.bf16.mxu0 %vm463_vm0, %v462_v0  ;;  %v338_v3 = vld [vmem:[#allocation2] sm:$0xff]   ;;  %vm98_vm1 = vcmask 261120   ;;  %v145_v5 = vld [vmem:[#allocation7] sm:$0xf]  ;;  %v146_v8 = vld [vmem:[#allocation7 + $0x4] sm:$0xf] }
  0x39   :  { %316 = vmatpush3.bf16.msra.mxu0 %v336_v1  ;;  %v78_v6 = vshrl.u32 %v77_v4, 7  ;;  %v75_v7 = vld [vmem:[%s658_s2] sm:$0x1]  ;;  %vm147_vm2 = vcmp.gt.bf16.partialorder %v145_v5, 1056980736  ;;  %v464_v11 = vmov 0  }
  0x3a   :  { %317 = vmatprep.subr.bf16.mxu0 %v462_v0  ;;  %v76_v9 = vunpack.c.l.bf16 %v75_v7  ;;  %v155_v12 = vsel %vm147_vm2, 65537, %v464_v11  ;;  %vm148_vm3 = vcmp.gt.bf16.partialorder %v146_v8, 1056980736  ;;  %v309_v16 = vld [vmem:[%s659_s3] sm:$0xff]   ;;  %v589_v36 = vand.u32 127, %v77_v4  ;;  %s466_s2 = smov [#allocation8]  }
  0x3b   :  { %v79_v10 = vsub.s32 0, %v78_v6  ;;  %v157_v13 = vunpack.c.l.b16 %v155_v12  ;;  %v156_v15 = vsel %vm148_vm3, 65537, %v464_v11  ;;  %v310_v22 = vunpack.c.l.bf16 %v309_v16  ;;  %s275_s3 = sshll.u32 %s466_s2, 4  ;;  %s276_s3 = int_to_ptr.vmem [resolvable:$true] %s275_s3 }
  0x3c   :  { %v158_v19 = vunpack.c.l.b16 %v156_v15  ;;  %v311_v28 = vunpack.c.h.bf16 %v309_v16  ;;  %s405_s12 = scalar_lea.vmem %s276_s3, 256  ;;  %p410_p11 = scmp.lt.s32.totalorder %s276_s3, %s276_s3 }
  0x3d   :  { %318 = vmatpush3.bf16.msra.mxu0 %v337_v2  ;;  %v80_v14 = vrot.slane %v76_v9, %v79_v10  ;;  %vm563_vm4 = vcmp.ne.s32.totalorder %v157_v13, 0  ;;  %v465_v10 = vmov 1.0   ;;  %p406_p10 = scmp.ne.s32.totalorder %s276_s3, %s405_s12  ;;  %p411_p12 = scmp.lt.s32.totalorder %s405_s12, %s405_s12 }
  0x3e   :  { %vm576_vm5 = vcmp.ne.s32.totalorder %v158_v19, 0 }
  0x3f   :  { %p412_p13 = por %p411_p12, %p410_p11 }
  0x40   :  { %320 = vmatmul.mubr.msk.bf16.vlgmr.msra.gmra.mrb[0].mxu0 %vm98_vm1, %v338_v3 }
  0x41   :  { %p413_p0 = pnand %p412_p13, %p406_p10 }
 0x113   :  { %v136_v17 = vpop.f32.mrb[0].mxu0 }
 0x114   :  { %v567_v20 = vadd.f32 %v136_v17, %v80_v14  ;;  %v321_v21 = vpop.f32.mrb[1].mxu0 }
 0x115   :  { %v139_v23 = vpop.f32.mrb[2].mxu0 }
 0x116   :  { %143 = vst [vmem:[#allocation8] sm:$0xff] %v567_v20  ;;  %v570_v24 = vadd.f32 %v139_v23, %v80_v14  ;;  %v322_v25 = vpop.f32.mrb[3].mxu0  ;;  %v161_v26 = vsel %vm563_vm4, %v567_v20, 1e+30  ;;  %v199_v27 = vmul.f32 0.5, %v567_v20 }
 0x117   :  { %163 = vmin.xlane.f32.xlu1 %v161_v26 }
 0x118   :  { %144 = vst [vmem:[#allocation8 + $0x8] sm:$0xff] %v570_v24  ;;  %v201_v30 = vadd.f32 %v310_v22, %v199_v27  ;;  %v200_v31 = vmul.f32 0.5, %v570_v24  ;;  %v162_v33 = vsel %vm576_vm5, %v570_v24, 1e+30 }
 0x11a   :  { %v203_v32 = vsel %vm563_vm4, %v201_v30, 1e+30  ;;  %v202_v34 = vadd.f32 %v311_v28, %v200_v31 }
 0x11b   :  { %205 = vmin.xlane.f32.xlu0 %v203_v32  ;;  %165 = vmin.xlane.f32.xlu1 %v162_v33 }
 0x11c   :  { %v204_v35 = vsel %vm576_vm5, %v202_v34, 1e+30 }
 0x11f   :  { %207 = vmin.xlane.f32.xlu0 %v204_v35 }
 0x1a4   :  { %v164_v45 = vpop.xlane.xlu1 %163 }
 0x1a5   :  { %vm167_vm8 = vcmp.eq.f32.partialorder %v161_v26, %v164_v45 }
 0x1a6   :  { %v169_v48 = vsel %vm167_vm8, %v589_v36, 128 }
 0x1a7   :  { %v172_v52 = vshra.s32 %v169_v48, 16  ;;  %v171_v63 = vand.u32 65535, %v169_v48 }
 0x1a8   :  { %v206_v37 = vpop.xlane.xlu0 %205  ;;  %v166_v47 = vpop.xlane.xlu1 %165 }
 0x1a9   :  { %vm209_vm6 = vcmp.eq.f32.partialorder %v203_v32, %v206_v37  ;;  %vm168_vm9 = vcmp.eq.f32.partialorder %v162_v33, %v166_v47  ;;  %v174_v57 = vcvt.s32.f32 %v172_v52  ;;  %v173_v9 = vcvt.s32.f32 %v171_v63 }
 0x1aa   :  { %v211_v38 = vsel %vm209_vm6, %v589_v36, 128  ;;  %v170_v53 = vsel %vm168_vm9, %v589_v36, 128 }
 0x1ab   :  { %v214_v39 = vshra.s32 %v211_v38, 16  ;;  %v213_v46 = vand.u32 65535, %v211_v38  ;;  %v186_v58 = vshra.s32 %v170_v53, 16  ;;  %v185_v4 = vand.u32 65535, %v170_v53 }
 0x1ac   :  { %v208_v40 = vpop.xlane.xlu0 %207 }
 0x1ad   :  { %vm210_vm7 = vcmp.eq.f32.partialorder %v204_v35, %v208_v40  ;;  %v216_v41 = vcvt.s32.f32 %v214_v39  ;;  %v215_v51 = vcvt.s32.f32 %v213_v46  ;;  %v188_v60 = vcvt.s32.f32 %v186_v58 }
 0x1ae   :  { %v212_v42 = vsel %vm210_vm7, %v589_v36, 128  ;;  %v187_v16 = vcvt.s32.f32 %v185_v4 }
 0x1af   :  { %217 = vmin.xlane.f32.xlu0 %v216_v41  ;;  %v228_v43 = vshra.s32 %v212_v42, 16  ;;  %v227_v49 = vand.u32 65535, %v212_v42 }
 0x1b1   :  { %v230_v44 = vcvt.s32.f32 %v228_v43  ;;  %v229_v56 = vcvt.s32.f32 %v227_v49 }
 0x1b3   :  { %231 = vmin.xlane.f32.xlu1 %v230_v44 }
 0x23c   :  { %v218_v50 = vpop.xlane.xlu0 %217 }
 0x23d   :  { %vm219_vm10 = vcmp.eq.f32.partialorder %v216_v41, %v218_v50  ;;  %v224_v61 = vcvt.f32.s32 %v218_v50 }
 0x23e   :  { %v220_v54 = vsel %vm219_vm10, %v215_v51, inf }
 0x23f   :  { %221 = vmin.xlane.f32.xlu0 %v220_v54  ;;  %v225_v0 = vshll.u32 %v224_v61, 16 }
 0x240   :  { %v232_v55 = vpop.xlane.xlu1 %231 }
 0x241   :  { %vm233_vm11 = vcmp.eq.f32.partialorder %v230_v44, %v232_v55  ;;  %v238_v1 = vcvt.f32.s32 %v232_v55 }
 0x242   :  { %v234_v59 = vsel %vm233_vm11, %v229_v56, inf }
 0x243   :  { %175 = vmin.xlane.f32.xlu0 %v174_v57  ;;  %235 = vmin.xlane.f32.xlu1 %v234_v59  ;;  %v239_v7 = vshll.u32 %v238_v1, 16 }
 0x247   :  { %189 = vmin.xlane.f32.xlu1 %v188_v60 }
 0x2cc   :  { %v222_v62 = vpop.xlane.xlu0 %221 }
 0x2cd   :  { %v223_v2 = vcvt.f32.s32 %v222_v62 }
 0x2cf   :  { %v595_v3 = vadd.s32 %v225_v0, %v223_v2 }
 0x2d0   :  { %v176_v5 = vpop.xlane.xlu0 %175  ;;  %v236_v6 = vpop.xlane.xlu1 %235 }
 0x2d1   :  { %vm241_vm12 = vcmp.eq.s32.totalorder %v589_v36, %v595_v3  ;;  %v237_v8 = vcvt.f32.s32 %v236_v6  ;;  %vm177_vm13 = vcmp.eq.f32.partialorder %v174_v57, %v176_v5 }
 0x2d2   :  { %v243_v11 = vsel %vm241_vm12, 0.0, %v465_v10  ;;  %v178_v13 = vsel %vm177_vm13, %v173_v9, inf }
 0x2d3   :  { %v599_v12 = vadd.s32 %v239_v7, %v237_v8  ;;  %v245_v14 = vsub.f32 %v567_v20, %v243_v11  ;;  %179 = vmin.xlane.f32.xlu0 %v178_v13 }
 0x2d4   :  { %v190_v15 = vpop.xlane.xlu1 %189 }
 0x2d5   :  { %vm242_vm14 = vcmp.eq.s32.totalorder %v589_v36, %v599_v12  ;;  %vm191_vm15 = vcmp.eq.f32.partialorder %v188_v60, %v190_v15  ;;  %v247_v19 = vsel %vm563_vm4, %v245_v14, 0.0 }
 0x2d6   :  { %v192_v17 = vsel %vm191_vm15, %v187_v16, inf  ;;  %v244_v21 = vsel %vm242_vm14, 0.0, %v465_v10  ;;  %v249_v22 = vmul.f32 %v247_v19, %v247_v19 }
 0x2d7   :  { %193 = vmin.xlane.f32.xlu1 %v192_v17  ;;  %v246_v23 = vsub.f32 %v570_v24, %v244_v21 }
 0x2d8   :  { %251 = vadd.xlane.f32.xlu0 %v249_v22 }
 0x2d9   :  { %v248_v20 = vsel %vm576_vm5, %v246_v23, 0.0 }
 0x2da   :  { %v250_v25 = vmul.f32 %v248_v20, %v248_v20 }
 0x2dc   :  { %253 = vadd.xlane.f32.xlu1 %v250_v25 }
 0x2dd   :  { %416 = shalt.err (!%p413_p0)
}
 0x2de   :  { %s417_s15 = scalar_lea.hbm %s661_s5, 256 }
 0x2df   :  { %p418_p1 = scmp.ne.s32.totalorder %s661_s5, %s417_s15  ;;  %p421_p2 = scmp.lt.u32.totalorder %s417_s15, %s661_s5 }
 0x2e1   :  { %p423_p3 = pnand %p421_p2, %p418_p1 }
 0x2e3   :  { %426 = shalt.err (!%p423_p3)
}
 0x2e4   :  { %s467_s20 = smov 128   ;;  %s468_s1 = smov 8   ;;  %v182_v18 = vcvt.f32.s32 %v176_v5  ;;  %v196_v24 = vcvt.f32.s32 %v190_v15  ;;  %vm261_vm0 = vcmp.eq.s32.totalorder %v589_v36, 2  ;;  %vm258_vm1 = vcmp.eq.s32.totalorder %v589_v36, 1 }
 0x2e5   :  { %281 = dma.vmem_to_hbm [thread:$0]  %s276_s3, 256, %s661_s5, [#allocation4], %s467_s20, %s467_s20, %s468_s1   ;;  %vm255_vm2 = vcmp.eq.s32.totalorder %v589_v36, 0  ;;  %v256_v35 = vcvt.s32.f32 %v595_v3  ;;  %v257_v43 = vcvt.s32.f32 %v599_v12 }
 0x2e6   :  { %v183_v27 = vshll.u32 %v182_v18, 16  ;;  %v197_v31 = vshll.u32 %v196_v24, 16  ;;  %s469_s5 = smov [#allocation9]  }
 0x2e7   :  { %s287_s23 = sshll.u32 %s469_s5, 4  ;;  %s288_s23 = int_to_ptr.vmem [resolvable:$true] %s287_s23 }
 0x2e8   :  { %s427_s25 = scalar_lea.vmem %s288_s23, 256  ;;  %p432_p5 = scmp.lt.s32.totalorder %s288_s23, %s288_s23 }
 0x2e9   :  { %p428_p4 = scmp.ne.s32.totalorder %s288_s23, %s427_s25  ;;  %p433_p6 = scmp.lt.s32.totalorder %s427_s25, %s427_s25 }
 0x2eb   :  { %p434_p7 = por %p433_p6, %p432_p5 }
 0x2ed   :  { %p435_p8 = pnand %p434_p7, %p428_p4 }
 0x360   :  { %v180_v26 = vpop.xlane.xlu0 %179 }
 0x361   :  { %v181_v28 = vcvt.f32.s32 %v180_v26 }
 0x363   :  { %v184_v29 = vadd.s32 %v183_v27, %v181_v28 }
 0x364   :  { %v194_v30 = vpop.xlane.xlu1 %193 }
 0x365   :  { %v195_v32 = vcvt.f32.s32 %v194_v30  ;;  %v259_v33 = vcvt.s32.f32 %v184_v29  ;;  %v252_v34 = vpop.xlane.xlu0 %251 }
 0x366   :  { %v262_v38 = vsel %vm261_vm0, %v252_v34, 0.0 }
 0x367   :  { %v198_v37 = vadd.s32 %v197_v31, %v195_v32  ;;  %v264_v39 = vsel %vm258_vm1, %v259_v33, %v262_v38 }
 0x368   :  { %v266_v41 = vsel %vm255_vm2, %v256_v35, %v264_v39 }
 0x369   :  { %v260_v40 = vcvt.s32.f32 %v198_v37  ;;  %v254_v42 = vpop.xlane.xlu1 %253  ;;  %268 = vst [vmem:[#allocation9] sm:$0xff] %v266_v41 }
 0x36a   :  { %v263_v44 = vsel %vm261_vm0, %v254_v42, 0.0 }
 0x36b   :  { %v265_v45 = vsel %vm258_vm1, %v260_v40, %v263_v44 }
 0x36c   :  { %v267_v46 = vsel %vm255_vm2, %v257_v43, %v265_v45 }
 0x36d   :  { %269 = vst [vmem:[#allocation9 + $0x8] sm:$0xff] %v267_v46 }
 0x36e   :  { %438 = shalt.err (!%p435_p8)
}
 0x36f   :  { %s439_s28 = scalar_lea.hbm %s662_s6, 256 }
 0x370   :  { %p440_p9 = scmp.ne.s32.totalorder %s662_s6, %s439_s28  ;;  %p443_p10 = scmp.lt.u32.totalorder %s439_s28, %s662_s6 }
 0x372   :  { %p445_p11 = pnand %p443_p10, %p440_p9 }
 0x374   :  { %448 = shalt.err (!%p445_p11)
}
 0x375   :  { %293 = dma.vmem_to_hbm [thread:$0]  %s288_s23, 256, %s662_s6, [#allocation10], %s467_s20, %s467_s20, %s468_s1  }
 0x376   :  { %453 = dma.done.wait [#allocation4], 256  }
 0x377   :  { %454 = vsyncadd [#allocation4], 4294967040 }
 0x378   :  { %455 = dma.done.wait [#allocation10], 256  }
 0x379   :  { %456 = vsyncadd [#allocation10], 4294967040 }
 0x37a   :  { %300 = vsyncpa [#allocation3], 1 }
 0x37b   :  { %301 = vsyncpa [#allocation6], 1 }
 0x37c   :  { %302 = vsyncpa [#allocation4], 1 }
 0x37d   :  { %303 = vsyncpa [#allocation10], 1 }

</bundles_post_ra>
